<compile_context>
chip_gen: v7x
topology: tpu7x:2x2x1
jax: 0.10.0
libtpu: 0.0.40
codegen_flags: <defaults>
</compile_context>

<pallas_src>
import jax
import jax.numpy as jnp
from jax.experimental import pallas as pl
from jax.experimental.pallas import tpu as pltpu

_HPAD = 128   # hidden widths (80, 10) zero-padded up to one full lane tile
_LANE = 128


def _round_up(x, m):
    return (x + m - 1) // m * m


def _cdiv(a, b):
    return (a + b - 1) // b


# --------------------------------------------------------------------------- #
# Kernel
# --------------------------------------------------------------------------- #
def mlp_kernel(x_ref, w1_ref, b1_ref, w2_ref, b2_ref, w3_ref, b3_ref, o_ref):
    # fc_1 + ReLU.  (Dropout in eval mode == identity.)  Bias-add / ReLU stay
    # f32 (v5e VPU has no bf16 path); only dot operands may be narrow.
    h = jnp.dot(x_ref[...], w1_ref[...], preferred_element_type=jnp.float32)
    h = jnp.maximum(h + b1_ref[...], 0.0)                                 # (TB,128) f32

    # fc_2 + ReLU -- the dominant (TB,128)x(128,128) matmul; bf16 operands
    # (packed at init) with f32 accumulate cut the MXU pass count ~3x.
    h = jnp.dot(h.astype(w2_ref.dtype), w2_ref[...],
                preferred_element_type=jnp.float32)
    h = jnp.maximum(h + b2_ref[...], 0.0)                                 # (TB,128) f32

    # fc_3: (TB,128)x(128,1) -> (TB,1).  Output bytes/tile are tiny, so a plain
    # (possibly masked) lane-1 store is fine and avoids any transpose of h.
    out = jnp.dot(h.astype(w3_ref.dtype), w3_ref[...],
                  preferred_element_type=jnp.float32)
    o_ref[...] = (out + b3_ref[...]).astype(o_ref.dtype)                  # (TB,1)


# --------------------------------------------------------------------------- #
# Packing (call ONCE at init time, not per forward)
# --------------------------------------------------------------------------- #
def pack_params(params, *, x_dtype=jnp.float32, dot_dtype=jnp.bfloat16):
    """Pad hidden widths (80, 10) to 128 lanes (zero padding -> bit-exact) and
    cast the fc_2 / fc_3 weights to `dot_dtype`.  Hoisted out of the per-call
    path: for a net this small, per-call padding rivals the kernel runtime.

    `x_dtype` must match the dtype the caller stores x in (f32 or bf16) so the
    first matmul needs no wrapper-side cast (which would add HBM traffic)."""
    w1, b1, w2, b2, w3, b3 = params
    dim, h1 = w1.shape
    h2 = w2.shape[1]
    f32 = jnp.float32
    w1p = jnp.zeros((dim, _HPAD), f32).at[:, :h1].set(w1.astype(f32)).astype(x_dtype)
    b1p = jnp.zeros((1, _HPAD), f32).at[:, :h1].set(jnp.reshape(b1, (1, h1)).astype(f32))
    w2p = jnp.zeros((_HPAD, _HPAD), f32).at[:h1, :h2].set(w2.astype(f32)).astype(dot_dtype)
    b2p = jnp.zeros((1, _HPAD), f32).at[:, :h2].set(jnp.reshape(b2, (1, h2)).astype(f32))
    w3p = (jnp.zeros((_HPAD, 1), f32)
           .at[:h2, :].set(jnp.reshape(w3, (h2, 1)).astype(f32)).astype(dot_dtype))
    b3p = jnp.reshape(jnp.asarray(b3, f32), (1, 1))
    return (w1p, b1p, w2p, b2p, w3p, b3p)


# --------------------------------------------------------------------------- #
# Tile sizing (generation-aware)
# --------------------------------------------------------------------------- #
def _choose_tile(B, dim, x_itemsize, fixed_bytes, block_batch):
    try:
        vmem_cap = int(pltpu.get_tpu_info().vmem_capacity_bytes)
    except Exception:                                   # info unavailable
        vmem_cap = 64 * 1024 * 1024                     # v7x floor (most restrictive)
    # Per-batch-row VMEM bytes: x tile (double-buffered) + two f32 (.,128) h
    # intermediates + one bf16 copy at the dot operands + out tile (x2).
    per_row = 2 * dim * x_itemsize + 2 * _HPAD * 4 + _HPAD * 2 + 2 * 4
    budget = vmem_cap // 2 - fixed_bytes                # generous compiler headroom
    tb_cap = max(_LANE, (budget // per_row) // _LANE * _LANE)
    TB = min(_round_up(block_batch, _LANE), tb_cap, _round_up(B, _LANE))
    if B >= 2 * _LANE:
        # keep >= 2 grid steps so the "parallel" axis feeds both v7x TensorCores
        TB = min(TB, _round_up(_cdiv(B, 2), _LANE))
    G = _cdiv(B, TB)
    footprint = fixed_bytes + TB * per_row
    vmem_limit = int(min(vmem_cap, max(2 * footprint, 16 * 1024 * 1024)))
    return TB, G, vmem_limit


# --------------------------------------------------------------------------- #
# Forward wrapper
# --------------------------------------------------------------------------- #
def mlp_forward(x, packed_params, *, block_batch=8192):
    """x: (B, dim).  Returns (B,) float32 (== squeeze(dim=1) of the (B,1) logits).
    `packed_params` comes from pack_params()."""
    w1p, b1p, w2p, b2p, w3p, b3p = packed_params
    B, dim = x.shape
    assert w1p.shape == (dim, _HPAD)
    assert x.dtype == w1p.dtype, "pack_params(x_dtype=...) must match x.dtype"

    x_itemsize = jnp.dtype(x.dtype).itemsize
    fixed_bytes = sum(int(a.size) * jnp.dtype(a.dtype).itemsize for a in packed_params)
    TB, G, vmem_limit = _choose_tile(B, dim, x_itemsize, fixed_bytes, block_batch)
    B_pad = G * TB   # last x tile may read past B (unspecified rows, no cross-row
                     # reduction); the padded output rows are sliced off below.

    def _const(a):   # weights/biases: constant index_map -> VMEM-resident, no re-DMA
        return pl.BlockSpec(a.shape, lambda i, nd=a.ndim: (0,) * nd)

    in_specs = [pl.BlockSpec((TB, dim), lambda i: (i, 0))] + [
        _const(a) for a in packed_params]
    out_specs = pl.BlockSpec((TB, 1), lambda i: (i, 0))

    flops = 2 * B * (dim * _HPAD + _HPAD * _HPAD + _HPAD)
    bytes_accessed = int(x.size) * x_itemsize + B_pad * 4 + fixed_bytes

    out = pl.pallas_call(
        mlp_kernel,
        out_shape=jax.ShapeDtypeStruct((B_pad, 1), jnp.float32),
        grid=(G,),
        in_specs=in_specs,
        out_specs=out_specs,
        compiler_params=pltpu.CompilerParams(
            dimension_semantics=("parallel",),        # megacore sharding on v7x
            vmem_limit_bytes=vmem_limit),
        cost_estimate=pl.CostEstimate(
            flops=flops, transcendentals=0, bytes_accessed=bytes_accessed),
    )(x, w1p, b1p, w2p, b2p, w3p, b3p)

    return out[:B, 0]                                   # drop padding + squeeze(dim=1)


# --------------------------------------------------------------------------- #
# Init (torch.nn.Linear-style), test harness
# --------------------------------------------------------------------------- #
def init_params(key, dim):
    """U(-1/sqrt(in), 1/sqrt(in)) init; weights stored (in, out)."""
    dims = [(dim, 80), (80, 10), (10, 1)]
    params = []
    keys = jax.random.split(key, 2 * len(dims))
    for i, (fin, fout) in enumerate(dims):
        bound = 1.0 / jnp.sqrt(jnp.float32(fin))
        w = jax.random.uniform(keys[2 * i], (fin, fout), jnp.float32, -bound, bound)
        b = jax.random.uniform(keys[2 * i + 1], (1, fout), jnp.float32, -bound, bound)
        params += [w, b]
    return tuple(params)


if __name__ == "__main__":
    B, DIM = 256, 32
    key = jax.random.PRNGKey(0)
    kx, kp = jax.random.split(key)
    x = jax.random.normal(kx, (B, DIM), dtype=jnp.float32)
    params = init_params(kp, DIM)
    w1, b1, w2, b2, w3, b3 = params

    def ref_forward(xv):                 # eval-mode dropout == identity
        h = jnp.maximum(xv @ w1 + b1, 0.0)
        h = jnp.maximum(h @ w2 + b2, 0.0)
        return (h @ w3 + b3)[:, 0]

    y_ref = ref_forward(x)

    # 1) exact f32 dots: multi-tile grid (B=256 -> TB=128, G=2)
    packed_f32 = pack_params(params, dot_dtype=jnp.float32)
    y = mlp_forward(x, packed_f32)
    jax.block_until_ready(y)
    assert y.shape == (B,)
    assert jnp.allclose(y, y_ref, atol=1e-4, rtol=1e-4)

    # 2) default bf16 operands on fc_2 / fc_3 (f32 accumulate)
    packed = pack_params(params)
    y_bf = mlp_forward(x, packed)
    jax.block_until_ready(y_bf)
    assert jnp.allclose(y_bf, y_ref, atol=2e-2, rtol=2e-2)

    # 3) ragged batch (B not a multiple of the 128-row tile)
    y_small = mlp_forward(x[:40], packed_f32)
    jax.block_until_ready(y_small)
    assert y_small.shape == (40,)
    assert jnp.allclose(y_small, y_ref[:40], atol=1e-4, rtol=1e-4)

    # 4) caller stores x in bf16 (no wrapper-side cast): pack w1 to match
    x_bf16 = x.astype(jnp.bfloat16)      # done by the caller / data pipeline
    packed_xbf16 = pack_params(params, x_dtype=jnp.bfloat16)
    y_xbf = mlp_forward(x_bf16, packed_xbf16)
    jax.block_until_ready(y_xbf)
    y_xbf_ref = ref_forward(x_bf16.astype(jnp.float32))
    assert jnp.allclose(y_xbf, y_xbf_ref, atol=5e-2, rtol=5e-2)

    print("KERNEL_OK")
</pallas_src>

<mosaic_0001>
module attributes {stable_mosaic.version = 11 : i64} {
  func.func @mlp_kernel(%arg0: i32, %arg1: memref<128x32xf32, #tpu.memory_space<vmem>>, %arg2: memref<32x128xf32, #tpu.memory_space<vmem>>, %arg3: memref<1x128xf32, #tpu.memory_space<vmem>>, %arg4: memref<128x128xf32, #tpu.memory_space<vmem>>, %arg5: memref<1x128xf32, #tpu.memory_space<vmem>>, %arg6: memref<128x1xf32, #tpu.memory_space<vmem>>, %arg7: memref<1x1xf32, #tpu.memory_space<vmem>>, %arg8: memref<128x1xf32, #tpu.memory_space<vmem>>) attributes {dimension_semantics = [#tpu.dimension_semantics<parallel>], iteration_bounds = array<i64: 2>, scalar_prefetch = 0 : i64, scratch_operands = 0 : i64, tpu.core_type = #tpu.core_type<tc>, window_params = [{transform_indices = @transform_0, window_bounds = array<i64: 128, 32>}, {pipeline_mode = #tpu.pipeline_mode<synchronous>, transform_indices = @transform_1, window_bounds = array<i64: 32, 128>}, {pipeline_mode = #tpu.pipeline_mode<synchronous>, transform_indices = @transform_2, window_bounds = array<i64: 1, 128>}, {pipeline_mode = #tpu.pipeline_mode<synchronous>, transform_indices = @transform_3, window_bounds = array<i64: 128, 128>}, {pipeline_mode = #tpu.pipeline_mode<synchronous>, transform_indices = @transform_4, window_bounds = array<i64: 1, 128>}, {pipeline_mode = #tpu.pipeline_mode<synchronous>, transform_indices = @transform_5, window_bounds = array<i64: 128, 1>}, {pipeline_mode = #tpu.pipeline_mode<synchronous>, transform_indices = @transform_6, window_bounds = array<i64: 1, 1>}, {transform_indices = @transform_7, window_bounds = array<i64: 128, 1>}]} {
    %c0 = arith.constant 0 : index
    %c0_0 = arith.constant 0 : index
    %0 = vector.load %arg1[%c0, %c0_0] : memref<128x32xf32, #tpu.memory_space<vmem>>, vector<128x32xf32>
    %c0_1 = arith.constant 0 : index
    %c0_2 = arith.constant 0 : index
    %1 = vector.load %arg2[%c0_1, %c0_2] : memref<32x128xf32, #tpu.memory_space<vmem>>, vector<32x128xf32>
    %cst = arith.constant dense<0.000000e+00> : vector<128x128xf32>
    %2 = tpu.matmul %0, %1, %cst {dimension_numbers = #tpu.dot_dimension_numbers<[1], [0], [0], [1], [0, 0, 1, 1], [], []>} : vector<128x32xf32>, vector<32x128xf32>, vector<128x128xf32> -> vector<128x128xf32>
    %c0_3 = arith.constant 0 : index
    %c0_4 = arith.constant 0 : index
    %3 = vector.load %arg3[%c0_3, %c0_4] : memref<1x128xf32, #tpu.memory_space<vmem>>, vector<1x128xf32>
    %4 = vector.broadcast %3 : vector<1x128xf32> to vector<128x128xf32>
    %5 = arith.addf %2, %4 : vector<128x128xf32>
    %cst_5 = arith.constant 0.000000e+00 : f32
    %6 = vector.broadcast %cst_5 : f32 to vector<128x128xf32>
    %7 = arith.maximumf %5, %6 : vector<128x128xf32>
    %c0_6 = arith.constant 0 : index
    %c0_7 = arith.constant 0 : index
    %8 = vector.load %arg4[%c0_6, %c0_7] : memref<128x128xf32, #tpu.memory_space<vmem>>, vector<128x128xf32>
    %cst_8 = arith.constant dense<0.000000e+00> : vector<128x128xf32>
    %9 = tpu.matmul %7, %8, %cst_8 {dimension_numbers = #tpu.dot_dimension_numbers<[1], [0], [0], [1], [0, 0, 1, 1], [], []>} : vector<128x128xf32>, vector<128x128xf32>, vector<128x128xf32> -> vector<128x128xf32>
    %c0_9 = arith.constant 0 : index
    %c0_10 = arith.constant 0 : index
    %10 = vector.load %arg5[%c0_9, %c0_10] : memref<1x128xf32, #tpu.memory_space<vmem>>, vector<1x128xf32>
    %11 = vector.broadcast %10 : vector<1x128xf32> to vector<128x128xf32>
    %12 = arith.addf %9, %11 : vector<128x128xf32>
    %cst_11 = arith.constant 0.000000e+00 : f32
    %13 = vector.broadcast %cst_11 : f32 to vector<128x128xf32>
    %14 = arith.maximumf %12, %13 : vector<128x128xf32>
    %c0_12 = arith.constant 0 : index
    %c0_13 = arith.constant 0 : index
    %15 = vector.load %arg6[%c0_12, %c0_13] : memref<128x1xf32, #tpu.memory_space<vmem>>, vector<128x1xf32>
    %cst_14 = arith.constant dense<0.000000e+00> : vector<128x1xf32>
    %16 = tpu.matmul %14, %15, %cst_14 {dimension_numbers = #tpu.dot_dimension_numbers<[1], [0], [0], [1], [0, 0, 1, 1], [], []>} : vector<128x128xf32>, vector<128x1xf32>, vector<128x1xf32> -> vector<128x1xf32>
    %c0_15 = arith.constant 0 : index
    %c0_16 = arith.constant 0 : index
    %17 = vector.load %arg7[%c0_15, %c0_16] : memref<1x1xf32, #tpu.memory_space<vmem>>, vector<1x1xf32>
    %18 = vector.broadcast %17 : vector<1x1xf32> to vector<128x1xf32>
    %19 = arith.addf %16, %18 : vector<128x1xf32>
    %c0_17 = arith.constant 0 : index
    %c0_18 = arith.constant 0 : index
    %20 = vector.load %arg8[%c0_17, %c0_18] : memref<128x1xf32, #tpu.memory_space<vmem>>, vector<128x1xf32>
    tpu.vector_store %arg8[%c0_17, %c0_18], %19 {strides = array<i32>} : memref<128x1xf32, #tpu.memory_space<vmem>>, vector<128x1xf32>,
    return
  }
  func.func @transform_0(%arg0: i32) -> (i32, i32) {
    %c0_i32 = arith.constant 0 : i32
    %c0_i32_0 = arith.constant 0 : i32
    return %arg0, %c0_i32 : i32, i32
  }
  func.func @transform_1(%arg0: i32) -> (i32, i32) {
    %c0_i32 = arith.constant 0 : i32
    %c0_i32_0 = arith.constant 0 : i32
    %c0_i32_1 = arith.constant 0 : i32
    return %c0_i32, %c0_i32_0 : i32, i32
  }
  func.func @transform_2(%arg0: i32) -> (i32, i32) {
    %c0_i32 = arith.constant 0 : i32
    %c0_i32_0 = arith.constant 0 : i32
    %c0_i32_1 = arith.constant 0 : i32
    return %c0_i32, %c0_i32_0 : i32, i32
  }
  func.func @transform_3(%arg0: i32) -> (i32, i32) {
    %c0_i32 = arith.constant 0 : i32
    %c0_i32_0 = arith.constant 0 : i32
    %c0_i32_1 = arith.constant 0 : i32
    return %c0_i32, %c0_i32_0 : i32, i32
  }
  func.func @transform_4(%arg0: i32) -> (i32, i32) {
    %c0_i32 = arith.constant 0 : i32
    %c0_i32_0 = arith.constant 0 : i32
    %c0_i32_1 = arith.constant 0 : i32
    return %c0_i32, %c0_i32_0 : i32, i32
  }
  func.func @transform_5(%arg0: i32) -> (i32, i32) {
    %c0_i32 = arith.constant 0 : i32
    %c0_i32_0 = arith.constant 0 : i32
    %c0_i32_1 = arith.constant 0 : i32
    return %c0_i32, %c0_i32_0 : i32, i32
  }
  func.func @transform_6(%arg0: i32) -> (i32, i32) {
    %c0_i32 = arith.constant 0 : i32
    %c0_i32_0 = arith.constant 0 : i32
    %c0_i32_1 = arith.constant 0 : i32
    return %c0_i32, %c0_i32_0 : i32, i32
  }
  func.func @transform_7(%arg0: i32) -> (i32, i32) {
    %c0_i32 = arith.constant 0 : i32
    %c0_i32_0 = arith.constant 0 : i32
    return %arg0, %c0_i32 : i32, i32
  }
}

</mosaic_0001>

<bundles_post_ra>
// kernel: tpu_custom_call.1
= control target key start
LH: loop header
LB: loop body
LE: loop exit
PB: predicated region body
PF: predicated region fallthrough
CT: control target
= control target key end

     0   :  { %s1351_s26 = smov 0   ;;  %s1599_s0 = inlined_call_operand.vmem [shape: f32[256,32], index: 0, kind: input, shape index: {}]   ;;  %s1600_s1 = inlined_call_operand.vmem [shape: f32[32,128], index: 1, kind: input, shape index: {}]   ;;  %s1601_s2 = inlined_call_operand.vmem [shape: f32[1,128], index: 2, kind: input, shape index: {}]   ;;  %s1602_s3 = inlined_call_operand.vmem [shape: f32[128,128], index: 3, kind: input, shape index: {}]   ;;  %s1603_s4 = inlined_call_operand.vmem [shape: f32[1,128], index: 4, kind: input, shape index: {}]   ;;  %s1604_s5 = inlined_call_operand.vmem [shape: f32[128,1], index: 5, kind: input, shape index: {}]   ;;  %s1605_s6 = inlined_call_operand.<no memory space> [shape: f32[1,1], index: 6, kind: input, shape index: {}]   ;;  %s1606_s7 = inlined_call_operand.vmem [shape: f32[256,1], index: 7, kind: output, shape index: {}]  }
   0x1   :  { %v12_v0 = vstv %s1605_s6 }
   0x2   :  { %13 = vst [vmem:[#allocation2] sm:$0x1] %v12_v0 }
   0x3 LB: > { %s946_s27 = sadd.s32 4294967295, %s1306_s26   ;;  %p950_p0 = scmp.ge.s32.totalorder %s1306_s26, 1  ;;  %s1306_s26 = sphi %s1351_s26, %s19_s26  }
   0x4   : > { %p240_p1 = scmp.lt.s32.totalorder %s1306_s26, 3 }
   0x6   : > { %p241_p2 = pnand %p950_p0, %p240_p1 }
   0x7   : > { %v300_v1 = vld [vmem:[%s1600_s1] sm:$0xff] (!%p241_p2)  ;;  %v301_v2 = vld [vmem:[%s1600_s1 + $0x8] sm:$0xff] (!%p241_p2)  ;;  %v302_v3 = vld [vmem:[%s1600_s1 + $0x10] sm:$0xff] (!%p241_p2)  ;;  %s951_s10 = sshll.u32 (!%p241_p2), %s946_s27, 4  ;;  %vm311_vm0 = vcmask (!%p241_p2), 261120   ;;  %vm873_vm1 = vcmask (!%p241_p2), 7168  }
   0x8   : > { %244 = sbr.rel (%p241_p2) target bundleno = 700 (0x2bc), region = 48  ;;  %v1204_v4 = vpack.c.bf16 (!%p241_p2), %v301_v2, %v300_v1  ;;  %v303_v5 = vld [vmem:[%s1600_s1 + $0x18] sm:$0xff] (!%p241_p2)  ;;  %p273_p3 = scmp.lt.s32.totalorder (!%p241_p2), %s951_s10, 31  ;;  %v521_v6 = vld [vmem:[%s1602_s3] sm:$0xff] (!%p241_p2)  ;;  %v522_v7 = vld [vmem:[%s1602_s3 + $0x8] sm:$0xff] (!%p241_p2) }
   0x9   : > { %v1208_v8 = vpack.c.bf16 (!%p241_p2), %v303_v5, %v302_v3  ;;  %v1212_v9 = vpack.c.bf16 (!%p241_p2), %v522_v7, %v521_v6  ;;  %v523_v10 = vld [vmem:[%s1602_s3 + $0x10] sm:$0xff] (!%p241_p2)  ;;  %v524_v11 = vld [vmem:[%s1602_s3 + $0x18] sm:$0xff] (!%p241_p2)  ;;  %v525_v13 = vld [vmem:[%s1602_s3 + $0x20] sm:$0xff] (!%p241_p2) }
   0xa   : > { %1205 = vmatprep.subr.bf16.mxu0 (!%p241_p2), %v1204_v4  ;;  %v1216_v12 = vpack.c.bf16 (!%p241_p2), %v524_v11, %v523_v10  ;;  %v526_v14 = vld [vmem:[%s1602_s3 + $0x28] sm:$0xff] (!%p241_p2)  ;;  %v527_v17 = vld [vmem:[%s1602_s3 + $0x30] sm:$0xff] (!%p241_p2)  ;;  %v528_v18 = vld [vmem:[%s1602_s3 + $0x38] sm:$0xff] (!%p241_p2) }
   0xb   : > { %1207 = vmatpush3.bf16.msra.mxu0 (!%p241_p2), %v1204_v4  ;;  %1213 = vmatprep.subr.bf16.mxu1 (!%p241_p2), %v1212_v9  ;;  %v1220_v15 = vpack.c.bf16 (!%p241_p2), %v526_v14, %v525_v13  ;;  %v1224_v21 = vpack.c.bf16 (!%p241_p2), %v528_v18, %v527_v17  ;;  %v529_v22 = vld [vmem:[%s1602_s3 + $0x40] sm:$0xff] (!%p241_p2)  ;;  %v530_v23 = vld [vmem:[%s1602_s3 + $0x48] sm:$0xff] (!%p241_p2)  ;;  %v531_v27 = vld [vmem:[%s1602_s3 + $0x50] sm:$0xff] (!%p241_p2) }
   0xc   : > { %1209 = vmatprep.subr.bf16.mxu0 (!%p241_p2), %v1208_v8  ;;  %1215 = vmatpush3.bf16.msra.mxu1 (!%p241_p2), %v1212_v9  ;;  %v1228_v26 = vpack.c.bf16 (!%p241_p2), %v530_v23, %v529_v22  ;;  %v532_v28 = vld [vmem:[%s1602_s3 + $0x58] sm:$0xff] (!%p241_p2)  ;;  %v533_v32 = vld [vmem:[%s1602_s3 + $0x60] sm:$0xff] (!%p241_p2)  ;;  %v534_v33 = vld [vmem:[%s1602_s3 + $0x68] sm:$0xff] (!%p241_p2) }
   0xd   : > { %1217 = vmatprep.subr.bf16.mxu1 (!%p241_p2), %v1216_v12  ;;  %v1232_v31 = vpack.c.bf16 (!%p241_p2), %v532_v28, %v531_v27  ;;  %v1236_v36 = vpack.c.bf16 (!%p241_p2), %v534_v33, %v533_v32  ;;  %v535_v44 = vld [vmem:[%s1602_s3 + $0x70] sm:$0xff] (!%p241_p2)  ;;  %v536_v45 = vld [vmem:[%s1602_s3 + $0x78] sm:$0xff] (!%p241_p2)  ;;  %v705_v47 = vld [vmem:[%s1604_s5] sm:$0xff] (!%p241_p2) }
   0xe   : > { %v1240_v46 = vpack.c.bf16 (!%p241_p2), %v536_v45, %v535_v44  ;;  %v706_v48 = vld [vmem:[%s1604_s5 + $0x8] sm:$0xff] (!%p241_p2)  ;;  %v707_v49 = vld [vmem:[%s1604_s5 + $0x10] sm:$0xff] (!%p241_p2)  ;;  %v708_v51 = vld [vmem:[%s1604_s5 + $0x18] sm:$0xff] (!%p241_p2) }
   0xf   : > { %s1608_s10 = smov (!%p273_p3, %s951_s10), 31  ;;  %1211 = vmatpush3.bf16.msra.mxu0 %v1208_v8  ;;  %v1244_v50 = vpack.c.bf16 %v706_v48, %v705_v47  ;;  %v1248_v52 = vpack.c.bf16 %v708_v51, %v707_v49  ;;  %v709_v53 = vld [vmem:[%s1604_s5 + $0x20] sm:$0xff]  ;;  %v710_v54 = vld [vmem:[%s1604_s5 + $0x28] sm:$0xff]  ;;  %v711_v56 = vld [vmem:[%s1604_s5 + $0x30] sm:$0xff] }
  0x10   : > { %s952_s25 = sshll.u32 %s1608_s10, 3  ;;  %1219 = vmatpush3.bf16.msra.mxu1 %v1216_v12  ;;  %v1252_v55 = vpack.c.bf16 %v710_v54, %v709_v53  ;;  %v712_v57 = vld [vmem:[%s1604_s5 + $0x38] sm:$0xff]  ;;  %v713_v59 = vld [vmem:[%s1604_s5 + $0x40] sm:$0xff]  ;;  %v714_v60 = vld [vmem:[%s1604_s5 + $0x48] sm:$0xff] }
  0x11   : > { %s1397_s29 = scalar_lea.vmem %s1599_s0, %s952_s25  ;;  %1221 = vmatprep.subr.bf16.mxu1 %v1220_v15  ;;  %1245 = vmatprep.subr.bf16.mxu0 %v1244_v50  ;;  %v1485_v58 = vpack.c.bf16 %v712_v57, %v711_v56  ;;  %v1494_v61 = vpack.c.bf16 %v714_v60, %v713_v59  ;;  %v715_v62 = vld [vmem:[%s1604_s5 + $0x50] sm:$0xff]  ;;  %v716_v63 = vld [vmem:[%s1604_s5 + $0x58] sm:$0xff]  ;;  %v717_v1 = vld [vmem:[%s1604_s5 + $0x60] sm:$0xff]  ;;  %s1562_s23 = scalar_lea.vmem %s1606_s7, %s952_s25 }
  0x12   : > { %v284_v16 = vld [vmem:[%s1397_s29] sm:$0xff]  ;;  %v285_v19 = vld [vmem:[%s1397_s29 + $0x8] sm:$0xff]  ;;  %v286_v20 = vld [vmem:[%s1397_s29 + $0x10] sm:$0xff]  ;;  %v1504_v0 = vpack.c.bf16 %v716_v63, %v715_v62 }
  0x13   : > { %1068 = vmatprep.mubr.msk.f32.mxu0 %vm311_vm0, %v284_v16  ;;  %v287_v24 = vld [vmem:[%s1397_s29 + $0x18] sm:$0xff]  ;;  %v288_v25 = vld [vmem:[%s1397_s29 + $0x20] sm:$0xff]  ;;  %v289_v29 = vld [vmem:[%s1397_s29 + $0x28] sm:$0xff] }
  0x14   : > { %1069 = vmatmul.mubr.msk.f32.vlgmr.msra.gmra.mrb[0].mxu0 %vm311_vm0, %v285_v19  ;;  %1223 = vmatpush3.bf16.msra.mxu1 %v1220_v15  ;;  %v290_v30 = vld [vmem:[%s1397_s29 + $0x30] sm:$0xff]  ;;  %v291_v34 = vld [vmem:[%s1397_s29 + $0x38] sm:$0xff]  ;;  %v292_v35 = vld [vmem:[%s1397_s29 + $0x40] sm:$0xff] }
  0x15   : > { %1071 = vmatprep.mubr.msk.f32.mxu0 %vm311_vm0, %v286_v20  ;;  %1225 = vmatprep.subr.bf16.mxu1 %v1224_v21  ;;  %v293_v37 = vld [vmem:[%s1397_s29 + $0x48] sm:$0xff]  ;;  %v294_v38 = vld [vmem:[%s1397_s29 + $0x50] sm:$0xff]  ;;  %v295_v39 = vld [vmem:[%s1397_s29 + $0x58] sm:$0xff] }
  0x16   : > { %v296_v40 = vld [vmem:[%s1397_s29 + $0x60] sm:$0xff]  ;;  %v297_v41 = vld [vmem:[%s1397_s29 + $0x68] sm:$0xff]  ;;  %v298_v42 = vld [vmem:[%s1397_s29 + $0x70] sm:$0xff]  ;;  %1247 = vmatpush3.bf16.msra.mxu0 %v1244_v50 }
  0x17   : > { %v299_v43 = vld [vmem:[%s1397_s29 + $0x78] sm:$0xff]  ;;  %1249 = vmatprep.subr.bf16.mxu0 %v1248_v52  ;;  %v718_v2 = vld [vmem:[%s1604_s5 + $0x68] sm:$0xff]  ;;  %v1522_v4 = vld [vmem:[%s1601_s2] ss:$0 sm:$0xff] }
  0x18   : > { %1072 = vmatmul.mubr.msk.f32.gmra.mrb[2].mxu0 %vm311_vm0, %v287_v24  ;;  %1227 = vmatpush3.bf16.msra.mxu1 %v1224_v21  ;;  %v1514_v3 = vpack.c.bf16 %v718_v2, %v717_v1  ;;  %v719_v53 = vld [vmem:[%s1604_s5 + $0x70] sm:$0xff]  ;;  %v720_v54 = vld [vmem:[%s1604_s5 + $0x78] sm:$0xff]  ;;  %v972_v56 = vld [vmem:[%s1603_s4] ss:$0 sm:$0xff] }
  0x19   : > { %1074 = vmatprep.mubr.msk.f32.mxu0 %vm311_vm0, %v288_v25  ;;  %1229 = vmatprep.subr.bf16.mxu1 %v1228_v26 }
  0x1a   : > { %1251 = vmatpush3.bf16.msra.mxu0 %v1248_v52 }
  0x1b   : > { %1253 = vmatprep.subr.bf16.mxu0 %v1252_v55 }
  0x1c   : > { %1075 = vmatmul.mubr.msk.f32.gmra.mrb[4].mxu0 %vm311_vm0, %v289_v29  ;;  %1231 = vmatpush3.bf16.msra.mxu1 %v1228_v26 }
  0x1d   : > { %1077 = vmatprep.mubr.msk.f32.mxu0 %vm311_vm0, %v290_v30  ;;  %1233 = vmatprep.subr.bf16.mxu1 %v1232_v31 }
  0x1e   : > { %1255 = vmatpush3.bf16.msra.mxu0 %v1252_v55 }
  0x1f   : > { %1257 = vmatprep.subr.bf16.mxu0 %v1485_v58 }
  0x20   : > { %1078 = vmatmul.mubr.msk.f32.gmra.mrb[6].mxu0 %vm311_vm0, %v291_v34  ;;  %1235 = vmatpush3.bf16.msra.mxu1 %v1232_v31 }
  0x21   : > { %1080 = vmatprep.mubr.msk.f32.mxu0 %vm311_vm0, %v292_v35  ;;  %1237 = vmatprep.subr.bf16.mxu1 %v1236_v36 }
  0x22   : > { %1259 = vmatpush3.bf16.msra.mxu0 %v1485_v58 }
  0x23   : > { %1261 = vmatprep.subr.bf16.mxu0 %v1494_v61 }
  0x24   : > { %1081 = vmatmul.mubr.msk.f32.gmra.mrb[8].mxu0 %vm311_vm0, %v293_v37  ;;  %1239 = vmatpush3.bf16.msra.mxu1 %v1236_v36 }
  0x25   : > { %1083 = vmatprep.mubr.msk.f32.mxu0 %vm311_vm0, %v294_v38  ;;  %1241 = vmatprep.subr.bf16.mxu1 %v1240_v46 }
  0x26   : > { %1263 = vmatpush3.bf16.msra.mxu0 %v1494_v61 }
  0x27   : > { %1265 = vmatprep.subr.bf16.mxu0 %v1504_v0 }
  0x28   : > { %1084 = vmatmul.mubr.msk.f32.gmra.mrb[10].mxu0 %vm311_vm0, %v295_v39  ;;  %1243 = vmatpush3.bf16.msra.mxu1 %v1240_v46 }
  0x29   : > { %1086 = vmatprep.mubr.msk.f32.mxu0 %vm311_vm0, %v296_v40  ;;  %1276 = vmatprep.subr.bf16.mxu1 %v1244_v50 }
  0x2a   : > { %1267 = vmatpush3.bf16.msra.mxu0 %v1504_v0 }
  0x2b   : > { %1269 = vmatprep.subr.bf16.mxu0 %v1514_v3 }
  0x2c   : > { %1087 = vmatmul.mubr.msk.f32.gmra.mrb[12].mxu0 %vm311_vm0, %v297_v41 }
  0x2d   : > { %1089 = vmatprep.mubr.msk.f32.mxu0 %vm311_vm0, %v298_v42 }
  0x2e   : > { %1271 = vmatpush3.bf16.msra.mxu0 %v1514_v3 }
  0x30   : > { %1090 = vmatmul.mubr.msk.f32.gmra.mrb[14].mxu0 %vm311_vm0, %v299_v43 }
  0xe7   : > { %v1070_v5 = vpop.f32.mrb[0].mxu0 }
  0xe8   : > { %v432_v6 = vadd.f32 %v1070_v5, %v1522_v4  ;;  %v426_v7 = vpop.f32.mrb[1].mxu0 }
  0xe9   : > { %v427_v8 = vadd.f32 %v1522_v4, %v426_v7 }
  0xea   : > { %v506_v11 = vmax.f32 %v432_v6, 0.0 }
  0xeb   : > { %v1073_v9 = vpop.f32.mrb[2].mxu0  ;;  %v505_v10 = vmax.f32 %v427_v8, 0.0 }
  0xec   : > { %v442_v12 = vadd.f32 %v1073_v9, %v1522_v4  ;;  %v436_v13 = vpop.f32.mrb[3].mxu0 }
  0xed   : > { %v437_v14 = vadd.f32 %v1522_v4, %v436_v13  ;;  %1124 = vmatprep.mubr.f32.mxu1 %v505_v10 }
  0xee   : > { %1125 = vmatmul.mubr.f32.vlgmr.msra.gmra.mrb[0].mxu1 %v506_v11  ;;  %v508_v17 = vmax.f32 %v442_v12, 0.0 }
  0xef   : > { %v507_v15 = vmax.f32 %v437_v14, 0.0  ;;  %v1076_v16 = vpop.f32.mrb[4].mxu0  ;;  %1284 = vmatpush3.bf16.msra.mxu1 %v1244_v50 }
  0xf0   : > { %v452_v18 = vadd.f32 %v1076_v16, %v1522_v4  ;;  %v446_v19 = vpop.f32.mrb[5].mxu0  ;;  %1277 = vmatprep.subr.bf16.mxu1 %v1248_v52 }
  0xf1   : > { %v447_v20 = vadd.f32 %v1522_v4, %v446_v19  ;;  %1127 = vmatprep.mubr.f32.mxu1 %v507_v15 }
  0xf2   : > { %1128 = vmatmul.mubr.f32.gmra.mrb[2].mxu1 %v508_v17  ;;  %v510_v23 = vmax.f32 %v452_v18, 0.0 }
  0xf3   : > { %v509_v21 = vmax.f32 %v447_v20, 0.0  ;;  %v1079_v22 = vpop.f32.mrb[6].mxu0  ;;  %1285 = vmatpush3.bf16.msra.mxu1 %v1248_v52 }
  0xf4   : > { %v462_v24 = vadd.f32 %v1079_v22, %v1522_v4  ;;  %v456_v25 = vpop.f32.mrb[7].mxu0  ;;  %1278 = vmatprep.subr.bf16.mxu1 %v1252_v55 }
  0xf5   : > { %v457_v26 = vadd.f32 %v1522_v4, %v456_v25  ;;  %1130 = vmatprep.mubr.f32.mxu1 %v509_v21 }
  0xf6   : > { %1131 = vmatmul.mubr.f32.gmra.mrb[4].mxu1 %v510_v23  ;;  %v512_v29 = vmax.f32 %v462_v24, 0.0 }
  0xf7   : > { %v511_v27 = vmax.f32 %v457_v26, 0.0  ;;  %v1082_v28 = vpop.f32.mrb[8].mxu0  ;;  %1286 = vmatpush3.bf16.msra.mxu1 %v1252_v55  ;;  %v1272_v55 = vpack.c.bf16 %v720_v54, %v719_v53 }
  0xf8   : > { %v472_v30 = vadd.f32 %v1082_v28, %v1522_v4  ;;  %v466_v31 = vpop.f32.mrb[9].mxu0  ;;  %1279 = vmatprep.subr.bf16.mxu1 %v1485_v58 }
  0xf9   : > { %v467_v32 = vadd.f32 %v1522_v4, %v466_v31  ;;  %1133 = vmatprep.mubr.f32.mxu1 %v511_v27  ;;  %1273 = vmatprep.subr.bf16.mxu0 %v1272_v55 }
  0xfa   : > { %1134 = vmatmul.mubr.f32.gmra.mrb[6].mxu1 %v512_v29  ;;  %v514_v35 = vmax.f32 %v472_v30, 0.0  ;;  %1275 = vmatpush3.bf16.msra.mxu0 %v1272_v55 }
  0xfb   : > { %v513_v33 = vmax.f32 %v467_v32, 0.0  ;;  %v1085_v34 = vpop.f32.mrb[10].mxu0  ;;  %1287 = vmatpush3.bf16.msra.mxu1 %v1485_v58 }
  0xfc   : > { %v482_v36 = vadd.f32 %v1085_v34, %v1522_v4  ;;  %v476_v37 = vpop.f32.mrb[11].mxu0  ;;  %1280 = vmatprep.subr.bf16.mxu1 %v1494_v61 }
  0xfd   : > { %v477_v38 = vadd.f32 %v1522_v4, %v476_v37  ;;  %1136 = vmatprep.mubr.f32.mxu1 %v513_v33 }
  0xfe   : > { %1137 = vmatmul.mubr.f32.gmra.mrb[8].mxu1 %v514_v35  ;;  %v516_v41 = vmax.f32 %v482_v36, 0.0 }
  0xff   : > { %v515_v39 = vmax.f32 %v477_v38, 0.0  ;;  %v1088_v40 = vpop.f32.mrb[12].mxu0  ;;  %1288 = vmatpush3.bf16.msra.mxu1 %v1494_v61 }
 0x100   : > { %v492_v42 = vadd.f32 %v1088_v40, %v1522_v4  ;;  %v486_v43 = vpop.f32.mrb[13].mxu0  ;;  %1281 = vmatprep.subr.bf16.mxu1 %v1504_v0 }
 0x101   : > { %v487_v44 = vadd.f32 %v1522_v4, %v486_v43  ;;  %1139 = vmatprep.mubr.f32.mxu1 %v515_v39 }
 0x102   : > { %1140 = vmatmul.mubr.f32.gmra.mrb[10].mxu1 %v516_v41  ;;  %v518_v47 = vmax.f32 %v492_v42, 0.0  ;;  %v973_v41 = vld [vmem:[#allocation2] ss:$0 sm:$0xff] }
 0x103   : > { %v517_v45 = vmax.f32 %v487_v44, 0.0  ;;  %v1091_v46 = vpop.f32.mrb[14].mxu0  ;;  %1289 = vmatpush3.bf16.msra.mxu1 %v1504_v0 }
 0x104   : > { %v502_v48 = vadd.f32 %v1091_v46, %v1522_v4  ;;  %v496_v49 = vpop.f32.mrb[15].mxu0  ;;  %1282 = vmatprep.subr.bf16.mxu1 %v1514_v3 }
 0x105   : > { %v497_v50 = vadd.f32 %v1522_v4, %v496_v49  ;;  %1142 = vmatprep.mubr.f32.mxu1 %v517_v45 }
 0x106   : > { %1143 = vmatmul.mubr.f32.gmra.mrb[12].mxu1 %v518_v47  ;;  %v520_v52 = vmax.f32 %v502_v48, 0.0 }
 0x107   : > { %v519_v51 = vmax.f32 %v497_v50, 0.0  ;;  %1290 = vmatpush3.bf16.msra.mxu1 %v1514_v3 }
 0x108   : > { %1283 = vmatprep.subr.bf16.mxu1 %v1272_v55 }
 0x109   : > { %1145 = vmatprep.mubr.f32.mxu1 %v519_v51 }
 0x10a   : > { %1146 = vmatmul.mubr.f32.gmra.mrb[14].mxu1 %v520_v52 }
 0x10b   : > { %1291 = vmatpush3.bf16.msra.mxu1 %v1272_v55 }
 0x1c1   : > { %v1126_v57 = vpop.f32.mrb[0].mxu1 }
 0x1c2   : > { %v616_v58 = vadd.f32 %v1126_v57, %v972_v56  ;;  %v610_v59 = vpop.f32.mrb[1].mxu1 }
 0x1c3   : > { %v611_v60 = vadd.f32 %v972_v56, %v610_v59 }
 0x1c4   : > { %v690_v63 = vmax.f32 %v616_v58, 0.0 }
 0x1c5   : > { %v689_v61 = vmax.f32 %v611_v60, 0.0  ;;  %v1129_v62 = vpop.f32.mrb[2].mxu1 }
 0x1c6   : > { %v626_v0 = vadd.f32 %v1129_v62, %v972_v56  ;;  %v620_v1 = vpop.f32.mrb[3].mxu1 }
 0x1c7   : > { %v621_v2 = vadd.f32 %v972_v56, %v620_v1  ;;  %1180 = vmatprep.mubr.f32.mxu0 %v689_v61 }
 0x1c8   : > { %1181 = vmatmul.mubr.f32.vlgmr.msra.gmra.mrb[16].mxu0 %v690_v63  ;;  %v692_v5 = vmax.f32 %v626_v0, 0.0 }
 0x1c9   : > { %v691_v3 = vmax.f32 %v621_v2, 0.0  ;;  %v1132_v4 = vpop.f32.mrb[4].mxu1 }
 0x1ca   : > { %v636_v6 = vadd.f32 %v1132_v4, %v972_v56  ;;  %v630_v7 = vpop.f32.mrb[5].mxu1 }
 0x1cb   : > { %v631_v8 = vadd.f32 %v972_v56, %v630_v7  ;;  %1183 = vmatprep.mubr.f32.mxu0 %v691_v3 }
 0x1cc   : > { %1184 = vmatmul.mubr.f32.gmra.mrb[18].mxu0 %v692_v5  ;;  %v694_v11 = vmax.f32 %v636_v6, 0.0 }
 0x1cd   : > { %v693_v9 = vmax.f32 %v631_v8, 0.0  ;;  %v1135_v10 = vpop.f32.mrb[6].mxu1 }
 0x1ce   : > { %v646_v12 = vadd.f32 %v1135_v10, %v972_v56  ;;  %v640_v13 = vpop.f32.mrb[7].mxu1 }
 0x1cf   : > { %v641_v14 = vadd.f32 %v972_v56, %v640_v13  ;;  %1186 = vmatprep.mubr.f32.mxu0 %v693_v9 }
 0x1d0   : > { %1187 = vmatmul.mubr.f32.gmra.mrb[20].mxu0 %v694_v11  ;;  %v696_v17 = vmax.f32 %v646_v12, 0.0 }
 0x1d1   : > { %v695_v15 = vmax.f32 %v641_v14, 0.0  ;;  %v1138_v16 = vpop.f32.mrb[8].mxu1 }
 0x1d2   : > { %v656_v18 = vadd.f32 %v1138_v16, %v972_v56  ;;  %v650_v19 = vpop.f32.mrb[9].mxu1 }
 0x1d3   : > { %v651_v20 = vadd.f32 %v972_v56, %v650_v19  ;;  %1189 = vmatprep.mubr.f32.mxu0 %v695_v15 }
 0x1d4   : > { %1190 = vmatmul.mubr.f32.gmra.mrb[22].mxu0 %v696_v17  ;;  %v698_v23 = vmax.f32 %v656_v18, 0.0 }
 0x1d5   : > { %v697_v21 = vmax.f32 %v651_v20, 0.0  ;;  %v1141_v22 = vpop.f32.mrb[10].mxu1 }
 0x1d6   : > { %v666_v24 = vadd.f32 %v1141_v22, %v972_v56  ;;  %v660_v25 = vpop.f32.mrb[11].mxu1 }
 0x1d7   : > { %v661_v26 = vadd.f32 %v972_v56, %v660_v25  ;;  %1192 = vmatprep.mubr.f32.mxu0 %v697_v21 }
 0x1d8   : > { %1193 = vmatmul.mubr.f32.gmra.mrb[24].mxu0 %v698_v23  ;;  %v700_v29 = vmax.f32 %v666_v24, 0.0 }
 0x1d9   : > { %v699_v27 = vmax.f32 %v661_v26, 0.0  ;;  %v1144_v28 = vpop.f32.mrb[12].mxu1 }
 0x1da   : > { %v676_v30 = vadd.f32 %v1144_v28, %v972_v56  ;;  %v670_v31 = vpop.f32.mrb[13].mxu1 }
 0x1db   : > { %v671_v32 = vadd.f32 %v972_v56, %v670_v31  ;;  %1195 = vmatprep.mubr.f32.mxu0 %v699_v27 }
 0x1dc   : > { %1196 = vmatmul.mubr.f32.gmra.mrb[26].mxu0 %v700_v29  ;;  %v702_v35 = vmax.f32 %v676_v30, 0.0 }
 0x1dd   : > { %v701_v33 = vmax.f32 %v671_v32, 0.0  ;;  %v1147_v34 = vpop.f32.mrb[14].mxu1 }
 0x1de   : > { %v686_v36 = vadd.f32 %v1147_v34, %v972_v56  ;;  %v680_v37 = vpop.f32.mrb[15].mxu1 }
 0x1df   : > { %v681_v38 = vadd.f32 %v972_v56, %v680_v37  ;;  %1198 = vmatprep.mubr.f32.mxu0 %v701_v33 }
 0x1e0   : > { %1199 = vmatmul.mubr.f32.gmra.mrb[28].mxu0 %v702_v35  ;;  %v704_v40 = vmax.f32 %v686_v36, 0.0 }
 0x1e1   : > { %v703_v39 = vmax.f32 %v681_v38, 0.0 }
 0x1e3   : > { %1201 = vmatprep.mubr.f32.mxu1 %v703_v39 }
 0x1e4   : > { %1202 = vmatmul.mubr.f32.vlgmr.msra.gmra.mrb[16].mxu1 %v704_v40 }
 0x29b   : > { %v1182_v42 = vpop.f32.mrb[16].mxu0 }
 0x29c   : > { %v800_v43 = vadd.f32 %v1182_v42, %v973_v41  ;;  %v794_v44 = vpop.f32.mrb[17].mxu0 }
 0x29d   : > { %v795_v45 = vadd.f32 %v973_v41, %v794_v44 }
 0x29e   : > { %875 = vst.msk [vmem:[%s1562_s23 + $0x8] sm:$0xff] %vm873_vm1, %v800_v43 }
 0x29f   : > { %874 = vst.msk [vmem:[%s1562_s23] sm:$0xff] %vm873_vm1, %v795_v45  ;;  %v1185_v46 = vpop.f32.mrb[18].mxu0 }
 0x2a0   : > { %v810_v47 = vadd.f32 %v1185_v46, %v973_v41  ;;  %v804_v48 = vpop.f32.mrb[19].mxu0 }
 0x2a1   : > { %v805_v49 = vadd.f32 %v973_v41, %v804_v48 }
 0x2a2   : > { %877 = vst.msk [vmem:[%s1562_s23 + $0x18] sm:$0xff] %vm873_vm1, %v810_v47 }
 0x2a3   : > { %876 = vst.msk [vmem:[%s1562_s23 + $0x10] sm:$0xff] %vm873_vm1, %v805_v49  ;;  %v1188_v50 = vpop.f32.mrb[20].mxu0 }
 0x2a4   : > { %v820_v51 = vadd.f32 %v1188_v50, %v973_v41  ;;  %v814_v52 = vpop.f32.mrb[21].mxu0 }
 0x2a5   : > { %v815_v53 = vadd.f32 %v973_v41, %v814_v52 }
 0x2a6   : > { %879 = vst.msk [vmem:[%s1562_s23 + $0x28] sm:$0xff] %vm873_vm1, %v820_v51 }
 0x2a7   : > { %878 = vst.msk [vmem:[%s1562_s23 + $0x20] sm:$0xff] %vm873_vm1, %v815_v53  ;;  %v1191_v54 = vpop.f32.mrb[22].mxu0 }
 0x2a8   : > { %v830_v55 = vadd.f32 %v1191_v54, %v973_v41  ;;  %v824_v56 = vpop.f32.mrb[23].mxu0 }
 0x2a9   : > { %v825_v57 = vadd.f32 %v973_v41, %v824_v56 }
 0x2aa   : > { %881 = vst.msk [vmem:[%s1562_s23 + $0x38] sm:$0xff] %vm873_vm1, %v830_v55 }
 0x2ab   : > { %880 = vst.msk [vmem:[%s1562_s23 + $0x30] sm:$0xff] %vm873_vm1, %v825_v57  ;;  %v1194_v58 = vpop.f32.mrb[24].mxu0 }
 0x2ac   : > { %v840_v59 = vadd.f32 %v1194_v58, %v973_v41  ;;  %v834_v60 = vpop.f32.mrb[25].mxu0 }
 0x2ad   : > { %v835_v61 = vadd.f32 %v973_v41, %v834_v60 }
 0x2ae   : > { %883 = vst.msk [vmem:[%s1562_s23 + $0x48] sm:$0xff] %vm873_vm1, %v840_v59 }
 0x2af   : > { %882 = vst.msk [vmem:[%s1562_s23 + $0x40] sm:$0xff] %vm873_vm1, %v835_v61  ;;  %v1197_v62 = vpop.f32.mrb[26].mxu0 }
 0x2b0   : > { %v850_v63 = vadd.f32 %v1197_v62, %v973_v41  ;;  %v844_v0 = vpop.f32.mrb[27].mxu0 }
 0x2b1   : > { %v845_v1 = vadd.f32 %v973_v41, %v844_v0 }
 0x2b2   : > { %885 = vst.msk [vmem:[%s1562_s23 + $0x58] sm:$0xff] %vm873_vm1, %v850_v63 }
 0x2b3   : > { %884 = vst.msk [vmem:[%s1562_s23 + $0x50] sm:$0xff] %vm873_vm1, %v845_v1  ;;  %v1200_v2 = vpop.f32.mrb[28].mxu0 }
 0x2b4   : > { %v860_v3 = vadd.f32 %v1200_v2, %v973_v41  ;;  %v854_v4 = vpop.f32.mrb[29].mxu0 }
 0x2b5   : > { %v855_v5 = vadd.f32 %v973_v41, %v854_v4 }
 0x2b6   : > { %887 = vst.msk [vmem:[%s1562_s23 + $0x68] sm:$0xff] %vm873_vm1, %v860_v3 }
 0x2b7   : > { %886 = vst.msk [vmem:[%s1562_s23 + $0x60] sm:$0xff] %vm873_vm1, %v855_v5  ;;  %v1203_v6 = vpop.f32.mrb[16].mxu1 }
 0x2b8   : > { %v870_v7 = vadd.f32 %v1203_v6, %v973_v41  ;;  %v864_v8 = vpop.f32.mrb[17].mxu1 }
 0x2b9   : > { %v865_v9 = vadd.f32 %v973_v41, %v864_v8 }
 0x2ba   : > { %889 = vst.msk [vmem:[%s1562_s23 + $0x78] sm:$0xff] %vm873_vm1, %v870_v7 }
 0x2bb   : > { %888 = vst.msk [vmem:[%s1562_s23 + $0x70] sm:$0xff] %vm873_vm1, %v865_v9 }
 0x2bc PF: > { %s19_s26 = sadd.s32 1, %s1306_s26  }
 0x2bd   : > { %p16_p4 = scmp.ge.s32.totalorder %s19_s26, 4  }
 0x2bf   :  { %18 = sbr.rel (!%p16_p4) target bundleno = 3 (0x3), region = 78 }

</bundles_post_ra>
